<compile_context>
chip_gen: v7x
topology: tpu7x:2x2x1
jax: 0.10.0
libtpu: 0.0.40
codegen_flags: <defaults>
</compile_context>

<pallas_src>
import jax
import jax.numpy as jnp
from jax.experimental import pallas as pl
from jax.experimental.pallas import tpu as pltpu


def _round_up(x: int, m: int) -> int:
    return (x + m - 1) // m * m


# --------------------------------------------------------------------------
# Kernel: fused (Linear -> ReLU) x4 -> Linear on one (TB, Np) batch tile.
# Weights are bf16, accumulation/bias/ReLU in f32.
# --------------------------------------------------------------------------
def _mlp_kernel(y_ref,
                w1_ref, w2_ref, w3_ref, w4_ref, w5_ref,
                b_ref,
                o_ref):
    Hp = w1_ref.shape[1]   # padded hidden width
    Op = w5_ref.shape[1]   # padded output width

    h = y_ref[...].astype(jnp.bfloat16)
    h = jnp.dot(h, w1_ref[...], preferred_element_type=jnp.float32) + b_ref[0:1, :Hp]
    h = jnp.maximum(h, 0.0).astype(jnp.bfloat16)
    h = jnp.dot(h, w2_ref[...], preferred_element_type=jnp.float32) + b_ref[1:2, :Hp]
    h = jnp.maximum(h, 0.0).astype(jnp.bfloat16)
    h = jnp.dot(h, w3_ref[...], preferred_element_type=jnp.float32) + b_ref[2:3, :Hp]
    h = jnp.maximum(h, 0.0).astype(jnp.bfloat16)
    h = jnp.dot(h, w4_ref[...], preferred_element_type=jnp.float32) + b_ref[3:4, :Hp]
    h = jnp.maximum(h, 0.0).astype(jnp.bfloat16)
    h = jnp.dot(h, w5_ref[...], preferred_element_type=jnp.float32) + b_ref[4:5, :Op]

    o_ref[...] = h.astype(o_ref.dtype)


# --------------------------------------------------------------------------
# Parameter construction (matches the PyTorch init: W ~ N(0, 0.1), b = 0).
# Weights are stored pre-transposed as (in, out) so each layer is x @ W + b.
# --------------------------------------------------------------------------
def init_params(key, N, dtype=jnp.float32):
    H = N * 9 // 8
    dims = [(N, H), (H, H), (H, H), (H, H), (H, N)]
    params = []
    for (din, dout) in dims:
        key, wk = jax.random.split(key)
        w = 0.1 * jax.random.normal(wk, (din, dout), dtype=dtype)
        b = jnp.zeros((1, dout), dtype=dtype)
        params.append((w, b))
    return params


def pad_params(params, lane=128):
    """Zero-pad every weight dim to a multiple of `lane`, cast weights to bf16
    (done once, outside the solver loop), and stack the five biases into one
    (8, maxW) f32 slab (row l = layer l).  Padding is numerically inert."""
    ws = []
    douts = []
    for (w, b) in params:
        din, dout = w.shape
        dinp, doutp = _round_up(din, lane), _round_up(dout, lane)
        wp = jnp.zeros((dinp, doutp), jnp.bfloat16).at[:din, :dout].set(
            w.astype(jnp.bfloat16))
        ws.append(wp)
        douts.append(dout)

    max_w = max(w.shape[1] for w in ws)
    bstack = jnp.zeros((8, max_w), jnp.float32)
    for l, (w, b) in enumerate(params):
        bstack = bstack.at[l, :douts[l]].set(b.reshape(-1).astype(jnp.float32))

    return ws, bstack


# --------------------------------------------------------------------------
# Wrapper: Pallas equivalent of ODEFuncEX.forward(t, y).
# --------------------------------------------------------------------------
@jax.jit
def ode_func_ex(t, y, padded_params):
    del t  # unused by the network (same as the PyTorch module)
    ws, bstack = padded_params
    B, N = y.shape
    Np = ws[0].shape[0]    # padded input width of layer 1
    Op = ws[-1].shape[1]   # padded output width of layer 5

    # Batch-tile policy:
    #   B <= 128       : single tile (round up to 8 sublanes)
    #   B  > 128       : at least 2 tiles (v7x megacore), up to 512 rows each
    if B <= 128:
        TB = _round_up(max(B, 8), 8)
    else:
        TB = min(512, _round_up((B + 1) // 2, 8))
    Bp = _round_up(B, TB)

    # Skip the wrapper pad copy / output slice when shapes already conform.
    needs_pad = (Bp != B) or (Np != N)
    if needs_pad:
        yp = jnp.zeros((Bp, Np), y.dtype).at[:B, :N].set(y)
    else:
        yp = y

    # Advisory cost estimate (helps XLA overlap this call in solver loops).
    flops = 0
    bytes_accessed = Bp * Np * 4 + Bp * Op * 4 + bstack.size * 4
    for w in ws:
        flops += 2 * Bp * w.shape[0] * w.shape[1]
        bytes_accessed += w.size * 2          # bf16 weights

    grid = (Bp // TB,)
    y_spec = pl.BlockSpec((TB, Np), lambda i: (i, 0))
    o_spec = pl.BlockSpec((TB, Op), lambda i: (i, 0))
    # Weights/biases: full padded arrays, constant index_map -> fetched into
    # VMEM once and reused for every batch tile of the grid.
    w_specs = [pl.BlockSpec(w.shape, lambda i: (0, 0)) for w in ws]
    b_spec = pl.BlockSpec(bstack.shape, lambda i: (0, 0))

    out = pl.pallas_call(
        _mlp_kernel,
        out_shape=jax.ShapeDtypeStruct((Bp, Op), y.dtype),
        grid=grid,
        in_specs=[y_spec] + w_specs + [b_spec],
        out_specs=o_spec,
        compiler_params=pltpu.CompilerParams(
            dimension_semantics=("parallel",)),
        cost_estimate=pl.CostEstimate(
            flops=flops, transcendentals=0, bytes_accessed=bytes_accessed),
    )(yp, *ws, bstack)

    if (Bp != B) or (Op != N):
        out = out[:B, :N]
    return out


# --------------------------------------------------------------------------
# Pure-JAX f32 reference (unpadded params) for correctness checking.
# --------------------------------------------------------------------------
def _reference(y, params):
    h = y
    for i, (w, b) in enumerate(params):
        h = h @ w + b
        if i < len(params) - 1:
            h = jnp.maximum(h, 0.0)
    return h


if __name__ == "__main__":
    N = 128            # feature size -> hidden = N*9//8 = 144 (lane-padded to 256)
    B = 8              # small batch of ODE states for the demo
    key = jax.random.PRNGKey(0)
    k_params, k_y = jax.random.split(key)

    params = init_params(k_params, N)
    padded = pad_params(params)        # pad + bf16-cast once, reuse every RHS eval
    y = jax.random.normal(k_y, (B, N), dtype=jnp.float32)
    t = jnp.float32(0.0)

    out = ode_func_ex(t, y, padded)
    out = jax.block_until_ready(out)

    ref = _reference(y, params)
    assert out.shape == (B, N) and out.dtype == jnp.float32
    # bf16 matmul inputs with f32 accumulation -> relaxed tolerance vs f32 ref.
    assert jnp.allclose(out, ref, atol=5e-2, rtol=5e-2), "mismatch vs reference"

    # TODO(synk): the PyTorch module's nfe counter is Python-side state, not
    # part of the compute; track it in the solver loop if needed.
    print("KERNEL_OK")
</pallas_src>

<mosaic_0001>
module attributes {stable_mosaic.version = 11 : i64} {
  func.func @_mlp_kernel(%arg0: i32, %arg1: memref<8x128xf32, #tpu.memory_space<vmem>>, %arg2: memref<128x256xbf16, #tpu.memory_space<vmem>>, %arg3: memref<256x256xbf16, #tpu.memory_space<vmem>>, %arg4: memref<256x256xbf16, #tpu.memory_space<vmem>>, %arg5: memref<256x256xbf16, #tpu.memory_space<vmem>>, %arg6: memref<256x128xbf16, #tpu.memory_space<vmem>>, %arg7: memref<8x256xf32, #tpu.memory_space<vmem>>, %arg8: memref<8x128xf32, #tpu.memory_space<vmem>>) attributes {dimension_semantics = [#tpu.dimension_semantics<parallel>], iteration_bounds = array<i64: 1>, scalar_prefetch = 0 : i64, scratch_operands = 0 : i64, tpu.core_type = #tpu.core_type<tc>, window_params = [{transform_indices = @transform_0, window_bounds = array<i64: 8, 128>}, {pipeline_mode = #tpu.pipeline_mode<synchronous>, transform_indices = @transform_1, window_bounds = array<i64: 128, 256>}, {pipeline_mode = #tpu.pipeline_mode<synchronous>, transform_indices = @transform_2, window_bounds = array<i64: 256, 256>}, {pipeline_mode = #tpu.pipeline_mode<synchronous>, transform_indices = @transform_3, window_bounds = array<i64: 256, 256>}, {pipeline_mode = #tpu.pipeline_mode<synchronous>, transform_indices = @transform_4, window_bounds = array<i64: 256, 256>}, {pipeline_mode = #tpu.pipeline_mode<synchronous>, transform_indices = @transform_5, window_bounds = array<i64: 256, 128>}, {pipeline_mode = #tpu.pipeline_mode<synchronous>, transform_indices = @transform_6, window_bounds = array<i64: 8, 256>}, {transform_indices = @transform_7, window_bounds = array<i64: 8, 128>}]} {
    %c0 = arith.constant 0 : index
    %c0_0 = arith.constant 0 : index
    %0 = vector.load %arg1[%c0, %c0_0] : memref<8x128xf32, #tpu.memory_space<vmem>>, vector<8x128xf32>
    %1 = arith.truncf %0 : vector<8x128xf32> to vector<8x128xbf16>
    %c0_1 = arith.constant 0 : index
    %c0_2 = arith.constant 0 : index
    %2 = vector.load %arg2[%c0_1, %c0_2] : memref<128x256xbf16, #tpu.memory_space<vmem>>, vector<128x256xbf16>
    %cst = arith.constant dense<0.000000e+00> : vector<8x256xf32>
    %3 = tpu.matmul %1, %2, %cst {dimension_numbers = #tpu.dot_dimension_numbers<[1], [0], [0], [1], [0, 0, 1, 1], [], []>} : vector<8x128xbf16>, vector<128x256xbf16>, vector<8x256xf32> -> vector<8x256xf32>
    %c0_3 = arith.constant 0 : index
    %c0_4 = arith.constant 0 : index
    %4 = vector.load %arg7[%c0_3, %c0_4] : memref<8x256xf32, #tpu.memory_space<vmem>>, vector<1x256xf32>
    %5 = vector.broadcast %4 : vector<1x256xf32> to vector<8x256xf32>
    %6 = arith.addf %3, %5 : vector<8x256xf32>
    %cst_5 = arith.constant 0.000000e+00 : f32
    %7 = vector.broadcast %cst_5 : f32 to vector<8x256xf32>
    %8 = arith.maximumf %6, %7 : vector<8x256xf32>
    %9 = arith.truncf %8 : vector<8x256xf32> to vector<8x256xbf16>
    %c0_6 = arith.constant 0 : index
    %c0_7 = arith.constant 0 : index
    %10 = vector.load %arg3[%c0_6, %c0_7] : memref<256x256xbf16, #tpu.memory_space<vmem>>, vector<256x256xbf16>
    %cst_8 = arith.constant dense<0.000000e+00> : vector<8x256xf32>
    %11 = tpu.matmul %9, %10, %cst_8 {dimension_numbers = #tpu.dot_dimension_numbers<[1], [0], [0], [1], [0, 0, 1, 1], [], []>} : vector<8x256xbf16>, vector<256x256xbf16>, vector<8x256xf32> -> vector<8x256xf32>
    %c1 = arith.constant 1 : index
    %c0_9 = arith.constant 0 : index
    %12 = vector.load %arg7[%c1, %c0_9] : memref<8x256xf32, #tpu.memory_space<vmem>>, vector<1x256xf32>
    %13 = vector.broadcast %12 : vector<1x256xf32> to vector<8x256xf32>
    %14 = arith.addf %11, %13 : vector<8x256xf32>
    %cst_10 = arith.constant 0.000000e+00 : f32
    %15 = vector.broadcast %cst_10 : f32 to vector<8x256xf32>
    %16 = arith.maximumf %14, %15 : vector<8x256xf32>
    %17 = arith.truncf %16 : vector<8x256xf32> to vector<8x256xbf16>
    %c0_11 = arith.constant 0 : index
    %c0_12 = arith.constant 0 : index
    %18 = vector.load %arg4[%c0_11, %c0_12] : memref<256x256xbf16, #tpu.memory_space<vmem>>, vector<256x256xbf16>
    %cst_13 = arith.constant dense<0.000000e+00> : vector<8x256xf32>
    %19 = tpu.matmul %17, %18, %cst_13 {dimension_numbers = #tpu.dot_dimension_numbers<[1], [0], [0], [1], [0, 0, 1, 1], [], []>} : vector<8x256xbf16>, vector<256x256xbf16>, vector<8x256xf32> -> vector<8x256xf32>
    %c2 = arith.constant 2 : index
    %c0_14 = arith.constant 0 : index
    %20 = vector.load %arg7[%c2, %c0_14] : memref<8x256xf32, #tpu.memory_space<vmem>>, vector<1x256xf32>
    %21 = vector.broadcast %20 : vector<1x256xf32> to vector<8x256xf32>
    %22 = arith.addf %19, %21 : vector<8x256xf32>
    %cst_15 = arith.constant 0.000000e+00 : f32
    %23 = vector.broadcast %cst_15 : f32 to vector<8x256xf32>
    %24 = arith.maximumf %22, %23 : vector<8x256xf32>
    %25 = arith.truncf %24 : vector<8x256xf32> to vector<8x256xbf16>
    %c0_16 = arith.constant 0 : index
    %c0_17 = arith.constant 0 : index
    %26 = vector.load %arg5[%c0_16, %c0_17] : memref<256x256xbf16, #tpu.memory_space<vmem>>, vector<256x256xbf16>
    %cst_18 = arith.constant dense<0.000000e+00> : vector<8x256xf32>
    %27 = tpu.matmul %25, %26, %cst_18 {dimension_numbers = #tpu.dot_dimension_numbers<[1], [0], [0], [1], [0, 0, 1, 1], [], []>} : vector<8x256xbf16>, vector<256x256xbf16>, vector<8x256xf32> -> vector<8x256xf32>
    %c3 = arith.constant 3 : index
    %c0_19 = arith.constant 0 : index
    %28 = vector.load %arg7[%c3, %c0_19] : memref<8x256xf32, #tpu.memory_space<vmem>>, vector<1x256xf32>
    %29 = vector.broadcast %28 : vector<1x256xf32> to vector<8x256xf32>
    %30 = arith.addf %27, %29 : vector<8x256xf32>
    %cst_20 = arith.constant 0.000000e+00 : f32
    %31 = vector.broadcast %cst_20 : f32 to vector<8x256xf32>
    %32 = arith.maximumf %30, %31 : vector<8x256xf32>
    %33 = arith.truncf %32 : vector<8x256xf32> to vector<8x256xbf16>
    %c0_21 = arith.constant 0 : index
    %c0_22 = arith.constant 0 : index
    %34 = vector.load %arg6[%c0_21, %c0_22] : memref<256x128xbf16, #tpu.memory_space<vmem>>, vector<256x128xbf16>
    %cst_23 = arith.constant dense<0.000000e+00> : vector<8x128xf32>
    %35 = tpu.matmul %33, %34, %cst_23 {dimension_numbers = #tpu.dot_dimension_numbers<[1], [0], [0], [1], [0, 0, 1, 1], [], []>} : vector<8x256xbf16>, vector<256x128xbf16>, vector<8x128xf32> -> vector<8x128xf32>
    %c4 = arith.constant 4 : index
    %c0_24 = arith.constant 0 : index
    %36 = vector.load %arg7[%c4, %c0_24] : memref<8x256xf32, #tpu.memory_space<vmem>>, vector<1x128xf32>
    %37 = vector.broadcast %36 : vector<1x128xf32> to vector<8x128xf32>
    %38 = arith.addf %35, %37 : vector<8x128xf32>
    %c0_25 = arith.constant 0 : index
    %c0_26 = arith.constant 0 : index
    %39 = vector.load %arg8[%c0_25, %c0_26] : memref<8x128xf32, #tpu.memory_space<vmem>>, vector<8x128xf32>
    tpu.vector_store %arg8[%c0_25, %c0_26], %38 {strides = array<i32>} : memref<8x128xf32, #tpu.memory_space<vmem>>, vector<8x128xf32>,
    return
  }
  func.func @transform_0(%arg0: i32) -> (i32, i32) {
    %c0_i32 = arith.constant 0 : i32
    %c0_i32_0 = arith.constant 0 : i32
    return %arg0, %c0_i32 : i32, i32
  }
  func.func @transform_1(%arg0: i32) -> (i32, i32) {
    %c0_i32 = arith.constant 0 : i32
    %c0_i32_0 = arith.constant 0 : i32
    %c0_i32_1 = arith.constant 0 : i32
    return %c0_i32, %c0_i32_0 : i32, i32
  }
  func.func @transform_2(%arg0: i32) -> (i32, i32) {
    %c0_i32 = arith.constant 0 : i32
    %c0_i32_0 = arith.constant 0 : i32
    %c0_i32_1 = arith.constant 0 : i32
    return %c0_i32, %c0_i32_0 : i32, i32
  }
  func.func @transform_3(%arg0: i32) -> (i32, i32) {
    %c0_i32 = arith.constant 0 : i32
    %c0_i32_0 = arith.constant 0 : i32
    %c0_i32_1 = arith.constant 0 : i32
    return %c0_i32, %c0_i32_0 : i32, i32
  }
  func.func @transform_4(%arg0: i32) -> (i32, i32) {
    %c0_i32 = arith.constant 0 : i32
    %c0_i32_0 = arith.constant 0 : i32
    %c0_i32_1 = arith.constant 0 : i32
    return %c0_i32, %c0_i32_0 : i32, i32
  }
  func.func @transform_5(%arg0: i32) -> (i32, i32) {
    %c0_i32 = arith.constant 0 : i32
    %c0_i32_0 = arith.constant 0 : i32
    %c0_i32_1 = arith.constant 0 : i32
    return %c0_i32, %c0_i32_0 : i32, i32
  }
  func.func @transform_6(%arg0: i32) -> (i32, i32) {
    %c0_i32 = arith.constant 0 : i32
    %c0_i32_0 = arith.constant 0 : i32
    %c0_i32_1 = arith.constant 0 : i32
    return %c0_i32, %c0_i32_0 : i32, i32
  }
  func.func @transform_7(%arg0: i32) -> (i32, i32) {
    %c0_i32 = arith.constant 0 : i32
    %c0_i32_0 = arith.constant 0 : i32
    return %arg0, %c0_i32 : i32, i32
  }
}

</mosaic_0001>

<bundles_post_ra>
// kernel: ode_func_ex.1
= control target key start
LH: loop header
LB: loop body
LE: loop exit
PB: predicated region body
PF: predicated region fallthrough
CT: control target
= control target key end

     0   :  { %12 = vsyncpa [#allocation3], 0  ;;  %s1889_s0 = inlined_call_operand.hbm [shape: f32[8,128], index: 0, kind: input, shape index: {}]   ;;  %s1890_s1 = inlined_call_operand.hbm [shape: bf16[128,256], index: 1, kind: input, shape index: {}]   ;;  %s1891_s2 = inlined_call_operand.hbm [shape: bf16[256,256], index: 2, kind: input, shape index: {}]   ;;  %s1892_s3 = inlined_call_operand.hbm [shape: bf16[256,256], index: 3, kind: input, shape index: {}]   ;;  %s1893_s4 = inlined_call_operand.hbm [shape: bf16[256,256], index: 4, kind: input, shape index: {}]   ;;  %s1894_s5 = inlined_call_operand.hbm [shape: bf16[256,128], index: 5, kind: input, shape index: {}]   ;;  %s1895_s6 = inlined_call_operand.vmem [shape: f32[8,256], index: 6, kind: input, shape index: {}]   ;;  %s1896_s7 = inlined_call_operand.hbm [shape: f32[8,128], index: 7, kind: output, shape index: {}]  }
   0x1   :  { %13 = vsyncpa [#allocation6], 0 }
   0x2   :  { %14 = vsyncpa [#allocation9], 0 }
   0x3   :  { %15 = vsyncpa [#allocation12], 0 }
   0x4   :  { %16 = vsyncpa [#allocation4], 0  ;;  %s1714_s24 = smov [#allocation5]   ;;  %s1550_s28 = scalar_lea.hbm %s1890_s1, 2048 }
   0x5   :  { %s32_s25 = sshll.u32 %s1714_s24, 4  ;;  %p1551_p0 = scmp.ne.s32.totalorder %s1890_s1, %s1550_s28  ;;  %s33_s25 = int_to_ptr.vmem [resolvable:$true] %s32_s25 }
   0x6   :  { %p1554_p1 = scmp.lt.u32.totalorder %s1550_s28, %s1890_s1 }
   0x8   :  { %p1556_p2 = pnand %p1554_p1, %p1551_p0 }
   0xa   :  { %1559 = shalt.err (!%p1556_p2)
}
   0xb   :  { %s1560_s10 = scalar_lea.vmem %s33_s25, 2048  ;;  %p1565_p4 = scmp.lt.s32.totalorder %s33_s25, %s33_s25 }
   0xc   :  { %p1561_p3 = scmp.ne.s32.totalorder %s33_s25, %s1560_s10  ;;  %p1566_p5 = scmp.lt.s32.totalorder %s1560_s10, %s1560_s10 }
   0xe   :  { %p1567_p6 = por %p1566_p5, %p1565_p4 }
  0x10   :  { %p1568_p7 = pnand %p1567_p6, %p1561_p3 }
  0x12   :  { %1571 = shalt.err (!%p1568_p7)
}
  0x13   :  { %s1715_s11 = smov 128   ;;  %s1716_s12 = smov 8  }
  0x14   :  { %38 = dma.hbm_to_vmem [thread:$0]  %s1890_s1, 2048, %s33_s25, [#allocation6], %s1715_s11, %s1715_s11, %s1716_s12  }
  0x15   :  { %s1717_s15 = smov [#allocation8]   ;;  %s1718_s17 = smov [#allocation2]  }
  0x16   :  { %s56_s16 = sshll.u32 %s1717_s15, 4  ;;  %s23_s18 = sshll.u32 %s1718_s17, 4  ;;  %s57_s16 = int_to_ptr.vmem [resolvable:$true] %s56_s16  ;;  %s24_s18 = int_to_ptr.vmem [resolvable:$true] %s23_s18 }
  0x17   :  { %s1572_s21 = scalar_lea.hbm %s1892_s3, 4096 }
  0x18   :  { %p1573_p8 = scmp.ne.s32.totalorder %s1892_s3, %s1572_s21  ;;  %p1576_p9 = scmp.lt.u32.totalorder %s1572_s21, %s1892_s3 }
  0x1a   :  { %p1578_p10 = pnand %p1576_p9, %p1573_p8 }
  0x1c   :  { %1581 = shalt.err (!%p1578_p10)
}
  0x1d   :  { %s1582_s1 = scalar_lea.vmem %s57_s16, 4096  ;;  %p1587_p12 = scmp.lt.s32.totalorder %s57_s16, %s57_s16 }
  0x1e   :  { %p1583_p11 = scmp.ne.s32.totalorder %s57_s16, %s1582_s1  ;;  %p1588_p13 = scmp.lt.s32.totalorder %s1582_s1, %s1582_s1 }
  0x20   :  { %p1589_p0 = por %p1588_p13, %p1587_p12 }
  0x22   :  { %p1590_p1 = pnand %p1589_p0, %p1583_p11 }
  0x24   :  { %1593 = shalt.err (!%p1590_p1)
}
  0x25   :  { %62 = dma.hbm_to_vmem [thread:$0]  %s1892_s3, 4096, %s57_s16, [#allocation9], %s1715_s11, %s1715_s11, %s1716_s12  }
  0x26   :  { %s1594_s30 = scalar_lea.hbm %s1889_s0, 128 }
  0x27   :  { %p1595_p2 = scmp.ne.s32.totalorder %s1889_s0, %s1594_s30  ;;  %p1598_p3 = scmp.lt.u32.totalorder %s1594_s30, %s1889_s0 }
  0x29   :  { %p1600_p4 = pnand %p1598_p3, %p1595_p2 }
  0x2b   :  { %1603 = shalt.err (!%p1600_p4)
}
  0x2c   :  { %s1604_s14 = scalar_lea.vmem %s24_s18, 128  ;;  %p1609_p6 = scmp.lt.s32.totalorder %s24_s18, %s24_s18 }
  0x2d   :  { %p1605_p5 = scmp.ne.s32.totalorder %s24_s18, %s1604_s14  ;;  %p1610_p7 = scmp.lt.s32.totalorder %s1604_s14, %s1604_s14 }
  0x2f   :  { %p1611_p8 = por %p1610_p7, %p1609_p6 }
  0x31   :  { %p1612_p9 = pnand %p1611_p8, %p1605_p5 }
  0x33   :  { %1615 = shalt.err (!%p1612_p9)
}
  0x34   :  { %26 = dma.hbm_to_vmem [thread:$0]  %s1889_s0, 128, %s24_s18, [#allocation3]  }
  0x35   :  { %s1719_s16 = smov [#allocation7]   ;;  %s1720_s19 = smov [#allocation10]  }
  0x36   :  { %s44_s17 = sshll.u32 %s1719_s16, 4  ;;  %s68_s20 = sshll.u32 %s1720_s19, 4  ;;  %s45_s17 = int_to_ptr.vmem [resolvable:$true] %s44_s17  ;;  %s69_s20 = int_to_ptr.vmem [resolvable:$true] %s68_s20 }
  0x37   :  { %s1616_s23 = scalar_lea.hbm %s1891_s2, 4096 }
  0x38   :  { %p1617_p10 = scmp.ne.s32.totalorder %s1891_s2, %s1616_s23  ;;  %p1620_p11 = scmp.lt.u32.totalorder %s1616_s23, %s1891_s2 }
  0x3a   :  { %p1622_p12 = pnand %p1620_p11, %p1617_p10 }
  0x3c   :  { %1625 = shalt.err (!%p1622_p12)
}
  0x3d   :  { %s1626_s0 = scalar_lea.vmem %s45_s17, 4096  ;;  %p1631_p0 = scmp.lt.s32.totalorder %s45_s17, %s45_s17 }
  0x3e   :  { %p1627_p13 = scmp.ne.s32.totalorder %s45_s17, %s1626_s0  ;;  %p1632_p1 = scmp.lt.s32.totalorder %s1626_s0, %s1626_s0 }
  0x40   :  { %p1633_p2 = por %p1632_p1, %p1631_p0 }
  0x42   :  { %p1634_p3 = pnand %p1633_p2, %p1627_p13 }
  0x44   :  { %1637 = shalt.err (!%p1634_p3)
}
  0x45   :  { %50 = dma.hbm_to_vmem [thread:$0]  %s1891_s2, 4096, %s45_s17, [#allocation6], %s1715_s11, %s1715_s11, %s1716_s12  }
  0x46   :  { %s1638_s30 = scalar_lea.hbm %s1893_s4, 4096 }
  0x47   :  { %p1639_p4 = scmp.ne.s32.totalorder %s1893_s4, %s1638_s30  ;;  %p1642_p5 = scmp.lt.u32.totalorder %s1638_s30, %s1893_s4 }
  0x49   :  { %p1644_p6 = pnand %p1642_p5, %p1639_p4 }
  0x4b   :  { %1647 = shalt.err (!%p1644_p6)
}
  0x4c   :  { %s1648_s14 = scalar_lea.vmem %s69_s20, 4096  ;;  %p1653_p8 = scmp.lt.s32.totalorder %s69_s20, %s69_s20 }
  0x4d   :  { %p1649_p7 = scmp.ne.s32.totalorder %s69_s20, %s1648_s14  ;;  %p1654_p9 = scmp.lt.s32.totalorder %s1648_s14, %s1648_s14 }
  0x4f   :  { %p1655_p10 = por %p1654_p9, %p1653_p8 }
  0x51   :  { %p1656_p11 = pnand %p1655_p10, %p1649_p7 }
  0x53   :  { %1659 = shalt.err (!%p1656_p11)
}
  0x54   :  { %74 = dma.hbm_to_vmem [thread:$0]  %s1893_s4, 4096, %s69_s20, [#allocation9], %s1715_s11, %s1715_s11, %s1716_s12  }
  0x55   :  { %s1721_s15 = smov [#allocation11]   ;;  %s1660_s21 = scalar_lea.hbm %s1894_s5, 2048 }
  0x56   :  { %s80_s16 = sshll.u32 %s1721_s15, 4  ;;  %p1661_p12 = scmp.ne.s32.totalorder %s1894_s5, %s1660_s21  ;;  %s81_s16 = int_to_ptr.vmem [resolvable:$true] %s80_s16 }
  0x57   :  { %p1664_p13 = scmp.lt.u32.totalorder %s1660_s21, %s1894_s5 }
  0x59   :  { %p1666_p0 = pnand %p1664_p13, %p1661_p12 }
  0x5b   :  { %1669 = shalt.err (!%p1666_p0)
}
  0x5c   :  { %s1670_s1 = scalar_lea.vmem %s81_s16, 2048  ;;  %p1675_p2 = scmp.lt.s32.totalorder %s81_s16, %s81_s16 }
  0x5d   :  { %p1671_p1 = scmp.ne.s32.totalorder %s81_s16, %s1670_s1  ;;  %p1676_p3 = scmp.lt.s32.totalorder %s1670_s1, %s1670_s1 }
  0x5f   :  { %p1677_p4 = por %p1676_p3, %p1675_p2 }
  0x61   :  { %p1678_p5 = pnand %p1677_p4, %p1671_p1 }
  0x63   :  { %1681 = shalt.err (!%p1678_p5)
}
  0x64   :  { %s1722_s4 = smov 64   ;;  %s1723_s11 = smov 4  }
  0x65   :  { %86 = dma.hbm_to_vmem [thread:$0]  %s1894_s5, 2048, %s81_s16, [#allocation12], %s1722_s4, %s1722_s4, %s1723_s11  }
  0x66   :  { %1704 = dma.done.wait [#allocation3], 128  }
  0x67   :  { %1705 = vsyncadd [#allocation3], 4294967168 }
  0x68   :  { %1706 = dma.done.wait [#allocation6], 6144  }
  0x69   :  { %1707 = vsyncadd [#allocation6], 4294961152 }
  0x6a   :  { %1708 = dma.done.wait [#allocation9], 8192  }
  0x6b   :  { %1709 = vsyncadd [#allocation9], 4294959104 }
  0x6c   :  { %1710 = dma.done.wait [#allocation12], 2048  }
  0x6d   :  { %1711 = vsyncadd [#allocation12], 4294965248  ;;  %v1724_v0 = vmov 0   ;;  %v1366_v1 = vld [vmem:[#allocation5 + $0x4] ss:$8 sps:$4 sm:$0xff]   ;;  %v108_v26 = vld [vmem:[#allocation2] sm:$0xff] }
  0x6e   :  { %250 = vmatprep.mubr.bf16.mxu0 %v1724_v0  ;;  %v1368_v2 = vld [vmem:[#allocation5] ss:$8 sps:$4 sm:$0xff]   ;;  %218 = vmatprep.subr.bf16.mxu0 %v1366_v1  ;;  %v1369_v3 = vld [vmem:[#allocation5 + $0x14] ss:$8 sps:$4 sm:$0xff]   ;;  %v1371_v4 = vld [vmem:[#allocation5 + $0x10] ss:$8 sps:$4 sm:$0xff]   ;;  %v109_v30 = vpack.c.bf16 %v108_v26, %v108_v26 }
  0x6f   :  { %219 = vmatpush1.bf16.msra.mxu0 %v1368_v2  ;;  %v1372_v5 = vld [vmem:[#allocation5 + $0x24] ss:$8 sps:$4 sm:$0xff]   ;;  %v1374_v6 = vld [vmem:[#allocation5 + $0x20] ss:$8 sps:$4 sm:$0xff]   ;;  %v1375_v7 = vld [vmem:[#allocation5 + $0x34] ss:$8 sps:$4 sm:$0xff]  }
  0x70   :  { %220 = vmatprep.subr.bf16.mxu0 %v1369_v3  ;;  %v1377_v8 = vld [vmem:[#allocation5 + $0x30] ss:$8 sps:$4 sm:$0xff]   ;;  %v1378_v9 = vld [vmem:[#allocation5 + $0x44] ss:$8 sps:$4 sm:$0xff]   ;;  %v1392_v11 = vld [vmem:[#allocation7] ss:$8 sps:$4 sm:$0xff]  }
  0x71   :  { %v1390_v10 = vld [vmem:[#allocation7 + $0x4] ss:$8 sps:$4 sm:$0xff]   ;;  %v1393_v12 = vld [vmem:[#allocation7 + $0x14] ss:$8 sps:$4 sm:$0xff]   ;;  %v1380_v13 = vld [vmem:[#allocation5 + $0x40] ss:$8 sps:$4 sm:$0xff]  }
  0x72   :  { %468 = vmatprep.subr.bf16.mxu1 %v1390_v10  ;;  %v1395_v14 = vld [vmem:[#allocation7 + $0x10] ss:$8 sps:$4 sm:$0xff]   ;;  %v1396_v15 = vld [vmem:[#allocation7 + $0x24] ss:$8 sps:$4 sm:$0xff]   ;;  %v1381_v16 = vld [vmem:[#allocation5 + $0x54] ss:$8 sps:$4 sm:$0xff]  }
  0x73   :  { %221 = vmatpush1.bf16.msra.mxu0 %v1371_v4  ;;  %469 = vmatpush1.bf16.msra.mxu1 %v1392_v11  ;;  %v1383_v17 = vld [vmem:[#allocation5 + $0x50] ss:$8 sps:$4 sm:$0xff]   ;;  %v1398_v18 = vld [vmem:[#allocation7 + $0x20] ss:$8 sps:$4 sm:$0xff]   ;;  %v1399_v19 = vld [vmem:[#allocation7 + $0x34] ss:$8 sps:$4 sm:$0xff]  }
  0x74   :  { %222 = vmatprep.subr.bf16.mxu0 %v1372_v5  ;;  %470 = vmatprep.subr.bf16.mxu1 %v1393_v12  ;;  %v1384_v20 = vld [vmem:[#allocation5 + $0x64] ss:$8 sps:$4 sm:$0xff]   ;;  %v1386_v21 = vld [vmem:[#allocation5 + $0x60] ss:$8 sps:$4 sm:$0xff]   ;;  %v1401_v22 = vld [vmem:[#allocation7 + $0x30] ss:$8 sps:$4 sm:$0xff]  }
  0x75   :  { %v1402_v23 = vld [vmem:[#allocation7 + $0x44] ss:$8 sps:$4 sm:$0xff]   ;;  %v1387_v24 = vld [vmem:[#allocation5 + $0x74] ss:$8 sps:$4 sm:$0xff]   ;;  %v1389_v25 = vld [vmem:[#allocation5 + $0x70] ss:$8 sps:$4 sm:$0xff]  }
  0x76   :  { %v1404_v27 = vld [vmem:[#allocation7 + $0x40] ss:$8 sps:$4 sm:$0xff]   ;;  %v1405_v28 = vld [vmem:[#allocation7 + $0x54] ss:$8 sps:$4 sm:$0xff]   ;;  %v1407_v29 = vld [vmem:[#allocation7 + $0x50] ss:$8 sps:$4 sm:$0xff]  }
  0x77   :  { %223 = vmatpush1.bf16.msra.mxu0 %v1374_v6  ;;  %471 = vmatpush1.bf16.msra.mxu1 %v1395_v14  ;;  %v1408_v31 = vld [vmem:[#allocation7 + $0x64] ss:$8 sps:$4 sm:$0xff]   ;;  %v1410_v32 = vld [vmem:[#allocation7 + $0x60] ss:$8 sps:$4 sm:$0xff]   ;;  %v1411_v33 = vld [vmem:[#allocation7 + $0x74] ss:$8 sps:$4 sm:$0xff]  }
  0x78   :  { %224 = vmatprep.subr.bf16.mxu0 %v1375_v7  ;;  %472 = vmatprep.subr.bf16.mxu1 %v1396_v15  ;;  %v1413_v34 = vld [vmem:[#allocation7 + $0x70] ss:$8 sps:$4 sm:$0xff]   ;;  %v1414_v35 = vld [vmem:[#allocation7 + $0x84] ss:$8 sps:$4 sm:$0xff]   ;;  %v1416_v36 = vld [vmem:[#allocation7 + $0x80] ss:$8 sps:$4 sm:$0xff]   ;;  %v128_v15 = vlaneseq }
  0x79   :  { %v1417_v37 = vld [vmem:[#allocation7 + $0x94] ss:$8 sps:$4 sm:$0xff]   ;;  %v1419_v38 = vld [vmem:[#allocation7 + $0x90] ss:$8 sps:$4 sm:$0xff]   ;;  %v1420_v39 = vld [vmem:[#allocation7 + $0xa4] ss:$8 sps:$4 sm:$0xff]  }
  0x7a   :  { %v1422_v40 = vld [vmem:[#allocation7 + $0xa0] ss:$8 sps:$4 sm:$0xff]   ;;  %v1423_v41 = vld [vmem:[#allocation7 + $0xb4] ss:$8 sps:$4 sm:$0xff]   ;;  %v1425_v42 = vld [vmem:[#allocation7 + $0xb0] ss:$8 sps:$4 sm:$0xff]  }
  0x7b   :  { %225 = vmatpush1.bf16.msra.mxu0 %v1377_v8  ;;  %473 = vmatpush1.bf16.msra.mxu1 %v1398_v18  ;;  %v1426_v43 = vld [vmem:[#allocation7 + $0xc4] ss:$8 sps:$4 sm:$0xff]   ;;  %v1428_v44 = vld [vmem:[#allocation7 + $0xc0] ss:$8 sps:$4 sm:$0xff]   ;;  %v1429_v45 = vld [vmem:[#allocation7 + $0xd4] ss:$8 sps:$4 sm:$0xff]  }
  0x7c   :  { %226 = vmatprep.subr.bf16.mxu0 %v1378_v9  ;;  %474 = vmatprep.subr.bf16.mxu1 %v1399_v19  ;;  %v1431_v46 = vld [vmem:[#allocation7 + $0xd0] ss:$8 sps:$4 sm:$0xff]   ;;  %v1432_v47 = vld [vmem:[#allocation7 + $0xe4] ss:$8 sps:$4 sm:$0xff]   ;;  %v1434_v48 = vld [vmem:[#allocation7 + $0xe0] ss:$8 sps:$4 sm:$0xff]  }
  0x7d   :  { %v1435_v49 = vld [vmem:[#allocation7 + $0xf4] ss:$8 sps:$4 sm:$0xff]   ;;  %v1437_v50 = vld [vmem:[#allocation7 + $0xf0] ss:$8 sps:$4 sm:$0xff]   ;;  %v1438_v51 = vld [vmem:[#allocation8] ss:$8 sps:$4 sm:$0xff]  }
  0x7e   :  { %v1440_v52 = vld [vmem:[#allocation8 + $0x4] ss:$8 sps:$4 sm:$0xff]   ;;  %v1443_v53 = vld [vmem:[#allocation8 + $0x14] ss:$8 sps:$4 sm:$0xff]   ;;  %v1441_v54 = vld [vmem:[#allocation8 + $0x10] ss:$8 sps:$4 sm:$0xff]  }
  0x7f   :  { %227 = vmatpush1.bf16.msra.mxu0 %v1380_v13  ;;  %475 = vmatpush1.bf16.msra.mxu1 %v1401_v22  ;;  %v1446_v55 = vld [vmem:[#allocation8 + $0x24] ss:$8 sps:$4 sm:$0xff]   ;;  %v1444_v56 = vld [vmem:[#allocation8 + $0x20] ss:$8 sps:$4 sm:$0xff]   ;;  %v1449_v57 = vld [vmem:[#allocation8 + $0x34] ss:$8 sps:$4 sm:$0xff]  }
  0x80   :  { %228 = vmatprep.subr.bf16.mxu0 %v1381_v16  ;;  %476 = vmatprep.subr.bf16.mxu1 %v1402_v23  ;;  %v1447_v58 = vld [vmem:[#allocation8 + $0x30] ss:$8 sps:$4 sm:$0xff]   ;;  %v1452_v59 = vld [vmem:[#allocation8 + $0x44] ss:$8 sps:$4 sm:$0xff]   ;;  %v1450_v60 = vld [vmem:[#allocation8 + $0x40] ss:$8 sps:$4 sm:$0xff]  }
  0x81   :  { %v1455_v61 = vld [vmem:[#allocation8 + $0x54] ss:$8 sps:$4 sm:$0xff]   ;;  %v1453_v62 = vld [vmem:[#allocation8 + $0x50] ss:$8 sps:$4 sm:$0xff]   ;;  %v1458_v63 = vld [vmem:[#allocation8 + $0x64] ss:$8 sps:$4 sm:$0xff]  }
  0x82   :  { %v1456_v0 = vld [vmem:[#allocation8 + $0x60] ss:$8 sps:$4 sm:$0xff]   ;;  %v1461_v1 = vld [vmem:[#allocation8 + $0x74] ss:$8 sps:$4 sm:$0xff]   ;;  %v1459_v2 = vld [vmem:[#allocation8 + $0x70] ss:$8 sps:$4 sm:$0xff]  }
  0x83   :  { %229 = vmatpush1.bf16.msra.mxu0 %v1383_v17  ;;  %477 = vmatpush1.bf16.msra.mxu1 %v1404_v27  ;;  %v1464_v3 = vld [vmem:[#allocation8 + $0x84] ss:$8 sps:$4 sm:$0xff]   ;;  %v1462_v4 = vld [vmem:[#allocation8 + $0x80] ss:$8 sps:$4 sm:$0xff]   ;;  %v1467_v5 = vld [vmem:[#allocation8 + $0x94] ss:$8 sps:$4 sm:$0xff]  }
  0x84   :  { %230 = vmatprep.subr.bf16.mxu0 %v1384_v20  ;;  %478 = vmatprep.subr.bf16.mxu1 %v1405_v28  ;;  %v1465_v6 = vld [vmem:[#allocation8 + $0x90] ss:$8 sps:$4 sm:$0xff]   ;;  %v1470_v7 = vld [vmem:[#allocation8 + $0xa4] ss:$8 sps:$4 sm:$0xff]   ;;  %v1468_v8 = vld [vmem:[#allocation8 + $0xa0] ss:$8 sps:$4 sm:$0xff]  }
  0x85   :  { %v1473_v9 = vld [vmem:[#allocation8 + $0xb4] ss:$8 sps:$4 sm:$0xff]   ;;  %v1471_v10 = vld [vmem:[#allocation8 + $0xb0] ss:$8 sps:$4 sm:$0xff]   ;;  %v1476_v11 = vld [vmem:[#allocation8 + $0xc4] ss:$8 sps:$4 sm:$0xff]  }
  0x86   :  { %v1474_v12 = vld [vmem:[#allocation8 + $0xc0] ss:$8 sps:$4 sm:$0xff]   ;;  %v1479_v13 = vld [vmem:[#allocation8 + $0xd4] ss:$8 sps:$4 sm:$0xff]   ;;  %v1477_v14 = vld [vmem:[#allocation8 + $0xd0] ss:$8 sps:$4 sm:$0xff]  }
  0x87   :  { %231 = vmatpush1.bf16.msra.mxu0 %v1386_v21  ;;  %479 = vmatpush1.bf16.msra.mxu1 %v1407_v29  ;;  %v129_v16 = vshrl.u32 %v128_v15, 7  ;;  %v126_v18 = vld [vmem:[%s1895_s6] ss:$8 sm:$0x3]  ;;  %v1533_v15 = vld [vmem:[#allocation10 + $0xf4] ss:$8 sps:$4 sm:$0xff]  }
  0x88   :  { %232 = vmatprep.subr.bf16.mxu0 %v1387_v24  ;;  %480 = vmatprep.subr.bf16.mxu1 %v1408_v31  ;;  %s1725_s10 = smov [#allocation13]  }
  0x89   :  { %v1850_v17 = vsub.s32 0, %v129_v16  ;;  %v1855_v19 = vsub.s32 1, %v129_v16  ;;  %v1531_v16 = vld [vmem:[#allocation10 + $0xf0] ss:$8 sps:$4 sm:$0xff]   ;;  %s1189_s13 = sshll.u32 %s1725_s10, 4  ;;  %s1190_s13 = int_to_ptr.vmem [resolvable:$true] %s1189_s13 }
  0x8a   :  { %s1682_s14 = scalar_lea.vmem %s1190_s13, 128  ;;  %p1687_p7 = scmp.lt.s32.totalorder %s1190_s13, %s1190_s13 }
  0x8b   :  { %233 = vmatpush1.bf16.msra.mxu0 %v1389_v25  ;;  %481 = vmatpush1.bf16.msra.mxu1 %v1410_v32  ;;  %v131_v20 = vrot.slane %v126_v18, %v1850_v17  ;;  %v135_v21 = vrot.slane %v126_v18, %v1855_v19  ;;  %v1482_v32 = vld [vmem:[#allocation8 + $0xe4] ss:$8 sps:$4 sm:$0xff]   ;;  %p1683_p6 = scmp.ne.s32.totalorder %s1190_s13, %s1682_s14  ;;  %p1688_p8 = scmp.lt.s32.totalorder %s1682_s14, %s1682_s14 }
  0x8c   :  { %482 = vmatprep.subr.bf16.mxu1 %v1411_v33  ;;  %718 = vmatprep.subr.bf16.mxu0 %v1440_v52  ;;  %v1480_v33 = vld [vmem:[#allocation8 + $0xe0] ss:$8 sps:$4 sm:$0xff]   ;;  %v1512_v52 = vld [vmem:[#allocation10 + $0x84] ss:$8 sps:$4 sm:$0xff]  }
  0x8d   :  { %v1534_v18 = vld [vmem:[#allocation11 + $0x40] sm:$0xff]   ;;  %p1689_p9 = por %p1688_p8, %p1687_p7 }
  0x8e   :  { %251 = vmatmul.mubr.bf16.vlgmr.msra.gmra.mrb[0].mxu0 %v109_v30 }
  0x8f   :  { %483 = vmatpush1.bf16.msra.mxu1 %v1413_v34  ;;  %719 = vmatpush1.bf16.msra.mxu0 %v1438_v51  ;;  %v1485_v34 = vld [vmem:[#allocation8 + $0xf4] ss:$8 sps:$4 sm:$0xff]   ;;  %v1507_v51 = vld [vmem:[#allocation10 + $0x70] ss:$8 sps:$4 sm:$0xff]   ;;  %p1690_p10 = pnand %p1689_p9, %p1683_p6 }
  0x90   :  { %484 = vmatprep.subr.bf16.mxu1 %v1414_v35  ;;  %720 = vmatprep.subr.bf16.mxu0 %v1443_v53  ;;  %v1483_v35 = vld [vmem:[#allocation8 + $0xf0] ss:$8 sps:$4 sm:$0xff]   ;;  %v1510_v53 = vld [vmem:[#allocation10 + $0x80] ss:$8 sps:$4 sm:$0xff]  }
  0x93   :  { %485 = vmatpush1.bf16.msra.mxu1 %v1416_v36  ;;  %721 = vmatpush1.bf16.msra.mxu0 %v1441_v54  ;;  %v1486_v36 = vld [vmem:[#allocation10] ss:$8 sps:$4 sm:$0xff]   ;;  %v1515_v54 = vld [vmem:[#allocation10 + $0x94] ss:$8 sps:$4 sm:$0xff]  }
  0x94   :  { %486 = vmatprep.subr.bf16.mxu1 %v1417_v37  ;;  %722 = vmatprep.subr.bf16.mxu0 %v1446_v55  ;;  %v1488_v37 = vld [vmem:[#allocation10 + $0x4] ss:$8 sps:$4 sm:$0xff]   ;;  %v1513_v55 = vld [vmem:[#allocation10 + $0x90] ss:$8 sps:$4 sm:$0xff]  }
  0x97   :  { %487 = vmatpush1.bf16.msra.mxu1 %v1419_v38  ;;  %723 = vmatpush1.bf16.msra.mxu0 %v1444_v56  ;;  %v1491_v38 = vld [vmem:[#allocation10 + $0x14] ss:$8 sps:$4 sm:$0xff]   ;;  %v1518_v56 = vld [vmem:[#allocation10 + $0xa4] ss:$8 sps:$4 sm:$0xff]  }
  0x98   :  { %488 = vmatprep.subr.bf16.mxu1 %v1420_v39  ;;  %724 = vmatprep.subr.bf16.mxu0 %v1449_v57  ;;  %v1489_v39 = vld [vmem:[#allocation10 + $0x10] ss:$8 sps:$4 sm:$0xff]   ;;  %v1516_v57 = vld [vmem:[#allocation10 + $0xa0] ss:$8 sps:$4 sm:$0xff]  }
  0x9b   :  { %489 = vmatpush1.bf16.msra.mxu1 %v1422_v40  ;;  %725 = vmatpush1.bf16.msra.mxu0 %v1447_v58  ;;  %v1494_v40 = vld [vmem:[#allocation10 + $0x24] ss:$8 sps:$4 sm:$0xff]   ;;  %v1521_v58 = vld [vmem:[#allocation10 + $0xb4] ss:$8 sps:$4 sm:$0xff]  }
  0x9c   :  { %490 = vmatprep.subr.bf16.mxu1 %v1423_v41  ;;  %726 = vmatprep.subr.bf16.mxu0 %v1452_v59  ;;  %v1492_v41 = vld [vmem:[#allocation10 + $0x20] ss:$8 sps:$4 sm:$0xff]   ;;  %v1519_v59 = vld [vmem:[#allocation10 + $0xb0] ss:$8 sps:$4 sm:$0xff]  }
  0x9f   :  { %491 = vmatpush1.bf16.msra.mxu1 %v1425_v42  ;;  %727 = vmatpush1.bf16.msra.mxu0 %v1450_v60  ;;  %v1497_v42 = vld [vmem:[#allocation10 + $0x34] ss:$8 sps:$4 sm:$0xff]   ;;  %v1524_v60 = vld [vmem:[#allocation10 + $0xc4] ss:$8 sps:$4 sm:$0xff]  }
  0xa0   :  { %492 = vmatprep.subr.bf16.mxu1 %v1426_v43  ;;  %728 = vmatprep.subr.bf16.mxu0 %v1455_v61  ;;  %v1495_v43 = vld [vmem:[#allocation10 + $0x30] ss:$8 sps:$4 sm:$0xff]   ;;  %v1522_v61 = vld [vmem:[#allocation10 + $0xc0] ss:$8 sps:$4 sm:$0xff]  }
  0xa3   :  { %493 = vmatpush1.bf16.msra.mxu1 %v1428_v44  ;;  %729 = vmatpush1.bf16.msra.mxu0 %v1453_v62  ;;  %v1500_v44 = vld [vmem:[#allocation10 + $0x44] ss:$8 sps:$4 sm:$0xff]   ;;  %v1527_v62 = vld [vmem:[#allocation10 + $0xd4] ss:$8 sps:$4 sm:$0xff]  }
  0xa4   :  { %494 = vmatprep.subr.bf16.mxu1 %v1429_v45  ;;  %730 = vmatprep.subr.bf16.mxu0 %v1458_v63  ;;  %v1498_v45 = vld [vmem:[#allocation10 + $0x40] ss:$8 sps:$4 sm:$0xff]   ;;  %v1525_v63 = vld [vmem:[#allocation10 + $0xd0] ss:$8 sps:$4 sm:$0xff]  }
  0xa7   :  { %495 = vmatpush1.bf16.msra.mxu1 %v1431_v46  ;;  %731 = vmatpush1.bf16.msra.mxu0 %v1456_v0  ;;  %v1503_v46 = vld [vmem:[#allocation10 + $0x54] ss:$8 sps:$4 sm:$0xff]   ;;  %v1217_v0 = vld [vmem:[%s1895_s6 + $0x1] ss:$8 sm:$0x3] }
  0xa8   :  { %496 = vmatprep.subr.bf16.mxu1 %v1432_v47  ;;  %732 = vmatprep.subr.bf16.mxu0 %v1461_v1  ;;  %v1501_v47 = vld [vmem:[#allocation10 + $0x50] ss:$8 sps:$4 sm:$0xff]   ;;  %v301_v1 = vrot.slane %v1217_v0, %v1850_v17 }
  0xab   :  { %497 = vmatpush1.bf16.msra.mxu1 %v1434_v48  ;;  %733 = vmatpush1.bf16.msra.mxu0 %v1459_v2  ;;  %v1506_v48 = vld [vmem:[#allocation10 + $0x64] ss:$8 sps:$4 sm:$0xff]   ;;  %v305_v2 = vrot.slane %v1217_v0, %v1855_v19 }
  0xac   :  { %498 = vmatprep.subr.bf16.mxu1 %v1435_v49  ;;  %734 = vmatprep.subr.bf16.mxu0 %v1464_v3  ;;  %v1504_v49 = vld [vmem:[#allocation10 + $0x60] ss:$8 sps:$4 sm:$0xff]  }
  0xaf   :  { %499 = vmatpush1.bf16.msra.mxu1 %v1437_v50  ;;  %735 = vmatpush1.bf16.msra.mxu0 %v1462_v4  ;;  %v1509_v50 = vld [vmem:[#allocation10 + $0x74] ss:$8 sps:$4 sm:$0xff]  }
  0xb0   :  { %736 = vmatprep.subr.bf16.mxu0 %v1467_v5  ;;  %968 = vmatprep.subr.bf16.mxu1 %v1488_v37 }
  0xb3   :  { %737 = vmatpush1.bf16.msra.mxu0 %v1465_v6 }
  0xb4   :  { %738 = vmatprep.subr.bf16.mxu0 %v1470_v7 }
  0xb7   :  { %739 = vmatpush1.bf16.msra.mxu0 %v1468_v8 }
  0xb8   :  { %740 = vmatprep.subr.bf16.mxu0 %v1473_v9 }
  0xbb   :  { %741 = vmatpush1.bf16.msra.mxu0 %v1471_v10 }
  0xbc   :  { %742 = vmatprep.subr.bf16.mxu0 %v1476_v11 }
  0xbf   :  { %743 = vmatpush1.bf16.msra.mxu0 %v1474_v12 }
  0xc0   :  { %744 = vmatprep.subr.bf16.mxu0 %v1479_v13  ;;  %v1530_v13 = vld [vmem:[#allocation10 + $0xe4] ss:$8 sps:$4 sm:$0xff]  }
  0xc3   :  { %745 = vmatpush1.bf16.msra.mxu0 %v1477_v14  ;;  %v1528_v14 = vld [vmem:[#allocation10 + $0xe0] ss:$8 sps:$4 sm:$0xff]  }
  0xc4   :  { %746 = vmatprep.subr.bf16.mxu0 %v1482_v32 }
  0xc7   :  { %747 = vmatpush1.bf16.msra.mxu0 %v1480_v33 }
  0xc8   :  { %748 = vmatprep.subr.bf16.mxu0 %v1485_v34 }
  0xcb   :  { %749 = vmatpush1.bf16.msra.mxu0 %v1483_v35 }
  0xcc   :  { %1332 = vmatprep.subr.bf16.mxu0 %v1534_v18 }
 0x161   :  { %v252_v22 = vpop.f32.mrb[0].mxu0 }
 0x162   :  { %v253_v23 = vadd.f32 %v252_v22, %v131_v20  ;;  %v254_v24 = vpop.f32.mrb[1].mxu0  ;;  %v1535_v20 = vld [vmem:[#allocation11] sm:$0xff]   ;;  %v1537_v22 = vld [vmem:[#allocation11 + $0x8] sm:$0xff]  }
 0x163   :  { %v255_v25 = vadd.f32 %v254_v24, %v135_v21  ;;  %v256_v26 = vpop.f32.mrb[2].mxu0  ;;  %v1536_v21 = vld [vmem:[#allocation11 + $0x48] sm:$0xff]   ;;  %v1539_v24 = vld [vmem:[#allocation11 + $0x10] sm:$0xff]  }
 0x164   :  { %v259_v27 = vmax.f32 %v253_v23, 0.0  ;;  %v257_v28 = vpop.f32.mrb[3].mxu0  ;;  %v1538_v23 = vld [vmem:[#allocation11 + $0x50] sm:$0xff]   ;;  %v1541_v26 = vld [vmem:[#allocation11 + $0x18] sm:$0xff]  }
 0x165   :  { %v260_v29 = vmax.f32 %v255_v25, 0.0  ;;  %v1540_v25 = vld [vmem:[#allocation11 + $0x58] sm:$0xff]   ;;  %v1543_v28 = vld [vmem:[#allocation11 + $0x20] sm:$0xff]  }
 0x166   :  { %v261_v31 = vpack.c.bf16 %v259_v27, %v259_v27  ;;  %v1542_v27 = vld [vmem:[#allocation11 + $0x60] sm:$0xff]  }
 0x167   :  { %v262_v30 = vpack.c.bf16 %v260_v29, %v260_v29  ;;  %v1544_v29 = vld [vmem:[#allocation11 + $0x68] sm:$0xff]  }
 0x169   :  { %500 = vmatprep.mubr.bf16.mxu1 %v262_v30  ;;  %v1545_v30 = vld [vmem:[#allocation11 + $0x28] sm:$0xff]  }
 0x16a   :  { %501 = vmatmul.mubr.bf16.vlgmr.msra.gmra.mrb[0].mxu1 %v261_v31  ;;  %v1250_v31 = vld [vmem:[%s1895_s6 + $0x2] ss:$8 sm:$0x3] }
 0x16b   :  { %969 = vmatpush1.bf16.msra.mxu1 %v1486_v36  ;;  %v551_v32 = vrot.slane %v1250_v31, %v1850_v17  ;;  %v555_v33 = vrot.slane %v1250_v31, %v1855_v19 }
 0x16c   :  { %970 = vmatprep.subr.bf16.mxu1 %v1491_v38 }
 0x16f   :  { %971 = vmatpush1.bf16.msra.mxu1 %v1489_v39 }
 0x170   :  { %972 = vmatprep.subr.bf16.mxu1 %v1494_v40 }
 0x173   :  { %973 = vmatpush1.bf16.msra.mxu1 %v1492_v41 }
 0x174   :  { %974 = vmatprep.subr.bf16.mxu1 %v1497_v42 }
 0x177   :  { %975 = vmatpush1.bf16.msra.mxu1 %v1495_v43 }
 0x178   :  { %976 = vmatprep.subr.bf16.mxu1 %v1500_v44  ;;  %v1546_v44 = vld [vmem:[#allocation11 + $0x70] sm:$0xff]  }
 0x17b   :  { %977 = vmatpush1.bf16.msra.mxu1 %v1498_v45  ;;  %v1547_v45 = vld [vmem:[#allocation11 + $0x30] sm:$0xff]  }
 0x17c   :  { %978 = vmatprep.subr.bf16.mxu1 %v1503_v46  ;;  %v1548_v46 = vld [vmem:[#allocation11 + $0x78] sm:$0xff]  }
 0x17f   :  { %979 = vmatpush1.bf16.msra.mxu1 %v1501_v47  ;;  %v1549_v47 = vld [vmem:[#allocation11 + $0x38] sm:$0xff]  }
 0x180   :  { %980 = vmatprep.subr.bf16.mxu1 %v1506_v48  ;;  %v1283_v48 = vld [vmem:[%s1895_s6 + $0x3] ss:$8 sm:$0x3] }
 0x183   :  { %981 = vmatpush1.bf16.msra.mxu1 %v1504_v49  ;;  %v801_v49 = vrot.slane %v1283_v48, %v1850_v17 }
 0x184   :  { %982 = vmatprep.subr.bf16.mxu1 %v1509_v50  ;;  %v805_v50 = vrot.slane %v1283_v48, %v1855_v19 }
 0x187   :  { %983 = vmatpush1.bf16.msra.mxu1 %v1507_v51 }
 0x188   :  { %984 = vmatprep.subr.bf16.mxu1 %v1512_v52 }
 0x18b   :  { %985 = vmatpush1.bf16.msra.mxu1 %v1510_v53 }
 0x18c   :  { %986 = vmatprep.subr.bf16.mxu1 %v1515_v54 }
 0x18f   :  { %987 = vmatpush1.bf16.msra.mxu1 %v1513_v55 }
 0x190   :  { %988 = vmatprep.subr.bf16.mxu1 %v1518_v56 }
 0x193   :  { %989 = vmatpush1.bf16.msra.mxu1 %v1516_v57 }
 0x194   :  { %990 = vmatprep.subr.bf16.mxu1 %v1521_v58 }
 0x197   :  { %991 = vmatpush1.bf16.msra.mxu1 %v1519_v59 }
 0x198   :  { %992 = vmatprep.subr.bf16.mxu1 %v1524_v60 }
 0x19b   :  { %993 = vmatpush1.bf16.msra.mxu1 %v1522_v61 }
 0x19c   :  { %994 = vmatprep.subr.bf16.mxu1 %v1527_v62  ;;  %v1045_v62 = vld [vmem:[%s1895_s6 + $0x4] ss:$0 sm:$0xff] }
 0x19f   :  { %995 = vmatpush1.bf16.msra.mxu1 %v1525_v63 }
 0x1a0   :  { %996 = vmatprep.subr.bf16.mxu1 %v1530_v13 }
 0x1a3   :  { %997 = vmatpush1.bf16.msra.mxu1 %v1528_v14 }
 0x1a4   :  { %998 = vmatprep.subr.bf16.mxu1 %v1533_v15 }
 0x1a7   :  { %999 = vmatpush1.bf16.msra.mxu1 %v1531_v16 }
 0x23d   :  { %v502_v3 = vpop.f32.mrb[0].mxu1 }
 0x23e   :  { %v503_v4 = vadd.f32 %v502_v3, %v301_v1  ;;  %v504_v5 = vpop.f32.mrb[1].mxu1 }
 0x23f   :  { %v505_v6 = vadd.f32 %v504_v5, %v305_v2  ;;  %v506_v7 = vpop.f32.mrb[2].mxu1 }
 0x240   :  { %v509_v8 = vmax.f32 %v503_v4, 0.0  ;;  %v507_v9 = vpop.f32.mrb[3].mxu1 }
 0x241   :  { %v510_v10 = vmax.f32 %v505_v6, 0.0 }
 0x242   :  { %v511_v12 = vpack.c.bf16 %v509_v8, %v509_v8 }
 0x243   :  { %v512_v11 = vpack.c.bf16 %v510_v10, %v510_v10 }
 0x245   :  { %750 = vmatprep.mubr.bf16.mxu0 %v512_v11 }
 0x246   :  { %751 = vmatmul.mubr.bf16.vlgmr.msra.gmra.mrb[4].mxu0 %v511_v12 }
 0x247   :  { %1333 = vmatpush3.bf16.msra.mxu0 %v1535_v20 }
 0x248   :  { %1334 = vmatprep.subr.bf16.mxu0 %v1536_v21 }
 0x24b   :  { %1335 = vmatpush3.bf16.msra.mxu0 %v1537_v22 }
 0x24c   :  { %1336 = vmatprep.subr.bf16.mxu0 %v1538_v23 }
 0x24f   :  { %1337 = vmatpush3.bf16.msra.mxu0 %v1539_v24 }
 0x250   :  { %1338 = vmatprep.subr.bf16.mxu0 %v1540_v25 }
 0x253   :  { %1339 = vmatpush3.bf16.msra.mxu0 %v1541_v26 }
 0x254   :  { %1340 = vmatprep.subr.bf16.mxu0 %v1542_v27 }
 0x257   :  { %1341 = vmatpush3.bf16.msra.mxu0 %v1543_v28 }
 0x258   :  { %1342 = vmatprep.subr.bf16.mxu0 %v1544_v29 }
 0x25b   :  { %1343 = vmatpush3.bf16.msra.mxu0 %v1545_v30 }
 0x25c   :  { %1344 = vmatprep.subr.bf16.mxu0 %v1546_v44 }
 0x25f   :  { %1345 = vmatpush3.bf16.msra.mxu0 %v1547_v45 }
 0x260   :  { %1346 = vmatprep.subr.bf16.mxu0 %v1548_v46 }
 0x263   :  { %1347 = vmatpush3.bf16.msra.mxu0 %v1549_v47 }
 0x319   :  { %v752_v34 = vpop.f32.mrb[4].mxu0 }
 0x31a   :  { %v753_v35 = vadd.f32 %v752_v34, %v551_v32  ;;  %v754_v36 = vpop.f32.mrb[5].mxu0 }
 0x31b   :  { %v755_v37 = vadd.f32 %v754_v36, %v555_v33  ;;  %v756_v38 = vpop.f32.mrb[6].mxu0 }
 0x31c   :  { %v759_v39 = vmax.f32 %v753_v35, 0.0  ;;  %v757_v40 = vpop.f32.mrb[7].mxu0 }
 0x31d   :  { %v760_v41 = vmax.f32 %v755_v37, 0.0 }
 0x31e   :  { %v761_v43 = vpack.c.bf16 %v759_v39, %v759_v39 }
 0x31f   :  { %v762_v42 = vpack.c.bf16 %v760_v41, %v760_v41 }
 0x321   :  { %1000 = vmatprep.mubr.bf16.mxu1 %v762_v42 }
 0x322   :  { %1001 = vmatmul.mubr.bf16.vlgmr.msra.gmra.mrb[4].mxu1 %v761_v43 }
 0x3f5   :  { %v1002_v51 = vpop.f32.mrb[4].mxu1 }
 0x3f6   :  { %v1003_v52 = vadd.f32 %v1002_v51, %v801_v49  ;;  %v1004_v53 = vpop.f32.mrb[5].mxu1 }
 0x3f7   :  { %v1005_v54 = vadd.f32 %v1004_v53, %v805_v50  ;;  %v1006_v55 = vpop.f32.mrb[6].mxu1 }
 0x3f8   :  { %v1009_v56 = vmax.f32 %v1003_v52, 0.0  ;;  %v1007_v57 = vpop.f32.mrb[7].mxu1 }
 0x3f9   :  { %v1010_v58 = vmax.f32 %v1005_v54, 0.0 }
 0x3fa   :  { %v1011_v60 = vpack.c.bf16 %v1009_v56, %v1009_v56 }
 0x3fb   :  { %v1012_v59 = vpack.c.bf16 %v1010_v58, %v1010_v58 }
 0x3fd   :  { %1174 = vmatprep.mubr.bf16.mxu0 %v1012_v59 }
 0x3fe   :  { %1175 = vmatmul.mubr.bf16.vlgmr.msra.gmra.mrb[8].mxu0 %v1011_v60 }
 0x4d1   :  { %v1348_v61 = vpop.f32.mrb[8].mxu0 }
 0x4d2   :  { %v1349_v17 = vpop.f32.mrb[9].mxu0 }
 0x4d3   :  { %v1350_v19 = vadd.f32 %v1349_v17, %v1348_v61  ;;  %v1351_v63 = vpop.f32.mrb[10].mxu0 }
 0x4d4   :  { %v1352_v0 = vpop.f32.mrb[11].mxu0 }
 0x4d5   :  { %v1177_v1 = vadd.f32 %v1350_v19, %v1045_v62 }
 0x4d7   :  { %1182 = vst [vmem:[#allocation13] sm:$0xff] %v1177_v1 }
 0x4d8   :  { %1693 = shalt.err (!%p1690_p10)
}
 0x4d9   :  { %s1694_s6 = scalar_lea.hbm %s1896_s7, 128 }
 0x4da   :  { %p1695_p11 = scmp.ne.s32.totalorder %s1896_s7, %s1694_s6  ;;  %p1698_p12 = scmp.lt.u32.totalorder %s1694_s6, %s1896_s7 }
 0x4dc   :  { %p1700_p13 = pnand %p1698_p12, %p1695_p11 }
 0x4de   :  { %1703 = shalt.err (!%p1700_p13)
}
 0x4df   :  { %1192 = dma.vmem_to_hbm [thread:$0]  %s1190_s13, 128, %s1896_s7, [#allocation4]  }
 0x4e0   :  { %1712 = dma.done.wait [#allocation4], 128  }
 0x4e1   :  { %1713 = vsyncadd [#allocation4], 4294967168 }
 0x4e2   :  { %1196 = vsyncpa [#allocation3], 1 }
 0x4e3   :  { %1197 = vsyncpa [#allocation6], 1 }
 0x4e4   :  { %1198 = vsyncpa [#allocation9], 1 }
 0x4e5   :  { %1199 = vsyncpa [#allocation12], 1 }
 0x4e6   :  { %1200 = vsyncpa [#allocation4], 1 }

</bundles_post_ra>
